<compile_context>
chip_gen: v6e
topology: v6e:2x2x1
jax: 0.10.0
libtpu: 0.0.40
codegen_flags: <defaults>
</compile_context>

<pallas_src>
import jax
import jax.numpy as jnp
from jax.experimental import pallas as pl
from jax.experimental.pallas import tpu as pltpu


# ---------------------------------------------------------------------------
# Kernel
# ---------------------------------------------------------------------------

def _se_scale(pooled, w1t, b1, w2t, b2):
    """SE gate from the already-pooled (Nt, C) activations.

    pooled : (Nt, C)  f32  -- sum over spatial (1/HW folded into w1t)
    w1t    : (C, Cr)  f32  -- conv1 weight, transposed, pre-scaled by 1/HW
    b1     : (1, Cr)  f32
    w2t    : (Cr, C)  f32  -- conv2 weight, transposed
    b2     : (1, C)   f32
    returns sigmoid(relu(pooled @ w1t + b1) @ w2t + b2)   # (Nt, C)
    """
    h = jnp.dot(pooled, w1t, preferred_element_type=jnp.float32) + b1
    h = jnp.maximum(h, 0.0)
    s = jnp.dot(h, w2t, preferred_element_type=jnp.float32) + b2
    return jax.nn.sigmoid(s)


def _sff_kernel(rgb_ref, depth_ref,
                w1r_ref, b1r_ref, w2r_ref, b2r_ref,
                w1d_ref, b1d_ref, w2d_ref, b2d_ref,
                out_ref):
    rgb = rgb_ref[...].astype(jnp.float32)      # (Nt, C, HW)
    depth = depth_ref[...].astype(jnp.float32)  # (Nt, C, HW)

    pooled_rgb = jnp.sum(rgb, axis=-1)          # (Nt, C)  (XLU lane reduce)
    pooled_depth = jnp.sum(depth, axis=-1)      # (Nt, C)

    s_rgb = _se_scale(pooled_rgb, w1r_ref[...], b1r_ref[...],
                      w2r_ref[...], b2r_ref[...])
    s_depth = _se_scale(pooled_depth, w1d_ref[...], b1d_ref[...],
                        w2d_ref[...], b2d_ref[...])

    y = rgb * s_rgb[:, :, None] + depth * s_depth[:, :, None]
    out_ref[...] = y.astype(out_ref.dtype)


# ---------------------------------------------------------------------------
# Wrapper
# ---------------------------------------------------------------------------

def _choose_block_n(N, C, HW, in_itemsize, out_itemsize,
                    budget_bytes=40 * 2**20):
    """Images per grid step.

    Fits double-buffered I/O + f32 temporaries inside the VMEM budget, keeps at
    least two grid steps when N >= 2 (v7x megacore), and is a divisor of N so
    no batch padding / ragged last block is needed.
    """
    per_img = C * HW * (2 * 2 * in_itemsize     # rgb + depth, 2 buffers each
                        + 2 * out_itemsize      # output, 2 buffers
                        + 3 * 4)                # in-kernel f32 temporaries
    nt_budget = max(1, int(budget_bytes // max(per_img, 1)))
    nt_cap = min(nt_budget, 8, N)
    if N >= 2:
        nt_cap = min(nt_cap, max(1, N // 2))    # keep >= 2 grid steps
    nt_cap = max(1, nt_cap)
    for nt in range(nt_cap, 0, -1):             # largest divisor of N <= cap
        if N % nt == 0:
            return nt
    return 1


def squeeze_excite_fusion_add(rgb, depth, params, *, block_n=None,
                              vmem_budget_bytes=40 * 2**20):
    """rgb, depth: (N, C, H, W) float32 or bfloat16.  Returns (N, C, H, W)."""
    assert rgb.shape == depth.shape
    assert rgb.dtype == depth.dtype
    N, C, H, W = rgb.shape
    HW = H * W
    out_dtype = rgb.dtype

    (w1r, b1r, w2r, b2r, w1d, b1d, w2d, b2d) = params
    Cr = w1r.shape[0]
    inv_hw = 1.0 / float(HW)

    # Pre-transpose weights (lane-major MLP) and fold 1/HW into the first one.
    w1r_t = (w1r.T * inv_hw).astype(jnp.float32)   # (C, Cr)
    w1d_t = (w1d.T * inv_hw).astype(jnp.float32)   # (C, Cr)
    w2r_t = w2r.T.astype(jnp.float32)              # (Cr, C)
    w2d_t = w2d.T.astype(jnp.float32)              # (Cr, C)
    b1r_r = b1r.reshape(1, Cr).astype(jnp.float32)
    b1d_r = b1d.reshape(1, Cr).astype(jnp.float32)
    b2r_r = b2r.reshape(1, C).astype(jnp.float32)
    b2d_r = b2d.reshape(1, C).astype(jnp.float32)

    # Contiguous (free) reshape; no spatial or batch padding.
    rgb_f = rgb.reshape(N, C, HW)
    depth_f = depth.reshape(N, C, HW)

    in_itemsize = rgb_f.dtype.itemsize
    out_itemsize = jnp.dtype(out_dtype).itemsize
    Nt = block_n if block_n is not None else _choose_block_n(
        N, C, HW, in_itemsize, out_itemsize, vmem_budget_bytes)
    assert N % Nt == 0, "block_n must divide the batch size"

    data_spec = pl.BlockSpec((Nt, C, HW), lambda n: (n, 0, 0))

    def wspec(shape):
        return pl.BlockSpec(shape, lambda n: (0,) * len(shape))

    # Explicit VMEM limit: double-buffered activations + f32 temps + weights.
    blk = Nt * C * HW
    est = blk * (2 * 2 * in_itemsize + 2 * out_itemsize + 3 * 4)
    est += 2 * 4 * 2 * (C * Cr + Cr + Cr * C + C)    # weights/biases, 2 bufs
    vmem_limit = int(min(56 * 2**20, max(32 * 2**20, est + (2 << 20))))

    out = pl.pallas_call(
        _sff_kernel,
        out_shape=jax.ShapeDtypeStruct((N, C, HW), out_dtype),
        grid_spec=pltpu.PrefetchScalarGridSpec(
            num_scalar_prefetch=0,
            grid=(N // Nt,),
            in_specs=[
                data_spec,           # rgb
                data_spec,           # depth
                wspec((C, Cr)),      # w1 rgb (transposed, /HW folded)
                wspec((1, Cr)),      # b1 rgb
                wspec((Cr, C)),      # w2 rgb (transposed)
                wspec((1, C)),       # b2 rgb
                wspec((C, Cr)),      # w1 depth
                wspec((1, Cr)),      # b1 depth
                wspec((Cr, C)),      # w2 depth
                wspec((1, C)),       # b2 depth
            ],
            out_specs=data_spec,
        ),
        compiler_params=pltpu.CompilerParams(
            dimension_semantics=("parallel",),
            vmem_limit_bytes=vmem_limit),
    )(rgb_f, depth_f,
      w1r_t, b1r_r, w2r_t, b2r_r,
      w1d_t, b1d_r, w2d_t, b2d_r)

    return out.reshape(N, C, H, W)


# ---------------------------------------------------------------------------
# Params & reference
# ---------------------------------------------------------------------------

def init_params(key, channels, reduction=16):
    """Deterministic init for the two SE blocks (1x1 convs => dense weights)."""
    cr = max(1, channels // reduction)
    keys = jax.random.split(key, 8)

    def u(k, fan_in, shape):
        bound = 1.0 / jnp.sqrt(fan_in)
        return jax.random.uniform(k, shape, jnp.float32, -bound, bound)

    w1r = u(keys[0], channels, (cr, channels)); b1r = u(keys[1], channels, (cr,))
    w2r = u(keys[2], cr, (channels, cr));       b2r = u(keys[3], cr, (channels,))
    w1d = u(keys[4], channels, (cr, channels)); b1d = u(keys[5], channels, (cr,))
    w2d = u(keys[6], cr, (channels, cr));       b2d = u(keys[7], cr, (channels,))
    return (w1r, b1r, w2r, b2r, w1d, b1d, w2d, b2d)


def reference(rgb, depth, params):
    """Pure-JAX reference matching the PyTorch forward exactly."""
    (w1r, b1r, w2r, b2r, w1d, b1d, w2d, b2d) = params

    def se(x, w1, b1, w2, b2):
        pooled = jnp.mean(x, axis=(2, 3))                # (N, C)
        h = jnp.maximum(pooled @ w1.T + b1, 0.0)         # (N, Cr)
        s = jax.nn.sigmoid(h @ w2.T + b2)                # (N, C)
        return x * s[:, :, None, None]

    return se(rgb, w1r, b1r, w2r, b2r) + se(depth, w1d, b1d, w2d, b2d)


# ---------------------------------------------------------------------------
# Demo / correctness check
# ---------------------------------------------------------------------------

if __name__ == "__main__":
    key = jax.random.PRNGKey(0)
    k_rgb, k_depth, k_params, k2 = jax.random.split(key, 4)

    # --- main test: aligned spatial dim ------------------------------------
    N, C, H, W = 2, 32, 16, 16   # channels must be >= reduction (16)
    rgb = jax.random.normal(k_rgb, (N, C, H, W), jnp.float32)
    depth = jax.random.normal(k_depth, (N, C, H, W), jnp.float32)
    params = init_params(k_params, C, reduction=16)
    ref = reference(rgb, depth, params)

    out = jax.block_until_ready(squeeze_excite_fusion_add(rgb, depth, params))
    assert out.shape == (N, C, H, W)
    assert jnp.allclose(out, ref, atol=2e-5, rtol=2e-5), "f32 mismatch vs reference"

    # bf16 storage path (halves HBM traffic; compute stays f32 in-kernel)
    out_bf16 = jax.block_until_ready(
        squeeze_excite_fusion_add(rgb.astype(jnp.bfloat16),
                                  depth.astype(jnp.bfloat16), params))
    assert out_bf16.dtype == jnp.bfloat16
    assert jnp.allclose(out_bf16.astype(jnp.float32), ref, atol=5e-2, rtol=5e-2), \
        "bf16 mismatch vs reference"

    # --- robustness test: odd batch / spatial dims (no padding path) -------
    N2, C2, H2, W2 = 3, 32, 5, 7
    ka, kb = jax.random.split(k2)
    rgb2 = jax.random.normal(ka, (N2, C2, H2, W2), jnp.float32)
    depth2 = jax.random.normal(kb, (N2, C2, H2, W2), jnp.float32)
    ref2 = reference(rgb2, depth2, params)
    out2 = jax.block_until_ready(squeeze_excite_fusion_add(rgb2, depth2, params))
    assert out2.shape == (N2, C2, H2, W2)
    assert jnp.allclose(out2, ref2, atol=2e-5, rtol=2e-5), "odd-shape mismatch"

    print("KERNEL_OK")
</pallas_src>

<mosaic_0001>
module attributes {stable_mosaic.version = 11 : i64} {
  func.func @_sff_kernel(%arg0: i32, %arg1: memref<1x32x256xf32, #tpu.memory_space<vmem>>, %arg2: memref<1x32x256xf32, #tpu.memory_space<vmem>>, %arg3: memref<32x2xf32, #tpu.memory_space<vmem>>, %arg4: memref<1x2xf32, #tpu.memory_space<vmem>>, %arg5: memref<2x32xf32, #tpu.memory_space<vmem>>, %arg6: memref<1x32xf32, #tpu.memory_space<vmem>>, %arg7: memref<32x2xf32, #tpu.memory_space<vmem>>, %arg8: memref<1x2xf32, #tpu.memory_space<vmem>>, %arg9: memref<2x32xf32, #tpu.memory_space<vmem>>, %arg10: memref<1x32xf32, #tpu.memory_space<vmem>>, %arg11: memref<1x32x256xf32, #tpu.memory_space<vmem>>) attributes {dimension_semantics = [#tpu.dimension_semantics<parallel>], iteration_bounds = array<i64: 2>, scalar_prefetch = 0 : i64, scratch_operands = 0 : i64, tpu.core_type = #tpu.core_type<tc>, window_params = [{transform_indices = @transform_0, window_bounds = array<i64: 1, 32, 256>}, {transform_indices = @transform_1, window_bounds = array<i64: 1, 32, 256>}, {pipeline_mode = #tpu.pipeline_mode<synchronous>, transform_indices = @transform_2, window_bounds = array<i64: 32, 2>}, {pipeline_mode = #tpu.pipeline_mode<synchronous>, transform_indices = @transform_3, window_bounds = array<i64: 1, 2>}, {pipeline_mode = #tpu.pipeline_mode<synchronous>, transform_indices = @transform_4, window_bounds = array<i64: 2, 32>}, {pipeline_mode = #tpu.pipeline_mode<synchronous>, transform_indices = @transform_5, window_bounds = array<i64: 1, 32>}, {pipeline_mode = #tpu.pipeline_mode<synchronous>, transform_indices = @transform_6, window_bounds = array<i64: 32, 2>}, {pipeline_mode = #tpu.pipeline_mode<synchronous>, transform_indices = @transform_7, window_bounds = array<i64: 1, 2>}, {pipeline_mode = #tpu.pipeline_mode<synchronous>, transform_indices = @transform_8, window_bounds = array<i64: 2, 32>}, {pipeline_mode = #tpu.pipeline_mode<synchronous>, transform_indices = @transform_9, window_bounds = array<i64: 1, 32>}, {transform_indices = @transform_10, window_bounds = array<i64: 1, 32, 256>}]} {
    %c0 = arith.constant 0 : index
    %c0_0 = arith.constant 0 : index
    %c0_1 = arith.constant 0 : index
    %0 = vector.load %arg1[%c0, %c0_0, %c0_1] : memref<1x32x256xf32, #tpu.memory_space<vmem>>, vector<1x32x256xf32>
    %c0_2 = arith.constant 0 : index
    %c0_3 = arith.constant 0 : index
    %c0_4 = arith.constant 0 : index
    %1 = vector.load %arg2[%c0_2, %c0_3, %c0_4] : memref<1x32x256xf32, #tpu.memory_space<vmem>>, vector<1x32x256xf32>
    %cst = arith.constant dense<0.000000e+00> : vector<1x32xf32>
    %2 = vector.multi_reduction <add>, %0, %cst [2] : vector<1x32x256xf32> to vector<1x32xf32>
    %cst_5 = arith.constant dense<0.000000e+00> : vector<1x32xf32>
    %3 = vector.multi_reduction <add>, %1, %cst_5 [2] : vector<1x32x256xf32> to vector<1x32xf32>
    %c0_6 = arith.constant 0 : index
    %c0_7 = arith.constant 0 : index
    %4 = vector.load %arg3[%c0_6, %c0_7] : memref<32x2xf32, #tpu.memory_space<vmem>>, vector<32x2xf32>
    %c0_8 = arith.constant 0 : index
    %c0_9 = arith.constant 0 : index
    %5 = vector.load %arg4[%c0_8, %c0_9] : memref<1x2xf32, #tpu.memory_space<vmem>>, vector<1x2xf32>
    %c0_10 = arith.constant 0 : index
    %c0_11 = arith.constant 0 : index
    %6 = vector.load %arg5[%c0_10, %c0_11] : memref<2x32xf32, #tpu.memory_space<vmem>>, vector<2x32xf32>
    %c0_12 = arith.constant 0 : index
    %c0_13 = arith.constant 0 : index
    %7 = vector.load %arg6[%c0_12, %c0_13] : memref<1x32xf32, #tpu.memory_space<vmem>>, vector<1x32xf32>
    %cst_14 = arith.constant dense<0.000000e+00> : vector<1x2xf32>
    %8 = tpu.matmul %2, %4, %cst_14 {dimension_numbers = #tpu.dot_dimension_numbers<[1], [0], [0], [1], [0, 0, 1, 1], [], []>} : vector<1x32xf32>, vector<32x2xf32>, vector<1x2xf32> -> vector<1x2xf32>
    %9 = arith.addf %8, %5 : vector<1x2xf32>
    %cst_15 = arith.constant 0.000000e+00 : f32
    %10 = vector.broadcast %cst_15 : f32 to vector<1x2xf32>
    %11 = arith.maximumf %9, %10 : vector<1x2xf32>
    %cst_16 = arith.constant dense<0.000000e+00> : vector<1x32xf32>
    %12 = tpu.matmul %11, %6, %cst_16 {dimension_numbers = #tpu.dot_dimension_numbers<[1], [0], [0], [1], [0, 0, 1, 1], [], []>} : vector<1x2xf32>, vector<2x32xf32>, vector<1x32xf32> -> vector<1x32xf32>
    %13 = arith.addf %12, %7 : vector<1x32xf32>
    %14 = arith.negf %13 : vector<1x32xf32>
    %15 = math.exp %14 : vector<1x32xf32>
    %cst_17 = arith.constant 1.000000e+00 : f32
    %16 = vector.broadcast %cst_17 : f32 to vector<1x32xf32>
    %17 = arith.addf %16, %15 : vector<1x32xf32>
    %18 = arith.divf %16, %17 : vector<1x32xf32>
    %c0_18 = arith.constant 0 : index
    %c0_19 = arith.constant 0 : index
    %19 = vector.load %arg7[%c0_18, %c0_19] : memref<32x2xf32, #tpu.memory_space<vmem>>, vector<32x2xf32>
    %c0_20 = arith.constant 0 : index
    %c0_21 = arith.constant 0 : index
    %20 = vector.load %arg8[%c0_20, %c0_21] : memref<1x2xf32, #tpu.memory_space<vmem>>, vector<1x2xf32>
    %c0_22 = arith.constant 0 : index
    %c0_23 = arith.constant 0 : index
    %21 = vector.load %arg9[%c0_22, %c0_23] : memref<2x32xf32, #tpu.memory_space<vmem>>, vector<2x32xf32>
    %c0_24 = arith.constant 0 : index
    %c0_25 = arith.constant 0 : index
    %22 = vector.load %arg10[%c0_24, %c0_25] : memref<1x32xf32, #tpu.memory_space<vmem>>, vector<1x32xf32>
    %cst_26 = arith.constant dense<0.000000e+00> : vector<1x2xf32>
    %23 = tpu.matmul %3, %19, %cst_26 {dimension_numbers = #tpu.dot_dimension_numbers<[1], [0], [0], [1], [0, 0, 1, 1], [], []>} : vector<1x32xf32>, vector<32x2xf32>, vector<1x2xf32> -> vector<1x2xf32>
    %24 = arith.addf %23, %20 : vector<1x2xf32>
    %cst_27 = arith.constant 0.000000e+00 : f32
    %25 = vector.broadcast %cst_27 : f32 to vector<1x2xf32>
    %26 = arith.maximumf %24, %25 : vector<1x2xf32>
    %cst_28 = arith.constant dense<0.000000e+00> : vector<1x32xf32>
    %27 = tpu.matmul %26, %21, %cst_28 {dimension_numbers = #tpu.dot_dimension_numbers<[1], [0], [0], [1], [0, 0, 1, 1], [], []>} : vector<1x2xf32>, vector<2x32xf32>, vector<1x32xf32> -> vector<1x32xf32>
    %28 = arith.addf %27, %22 : vector<1x32xf32>
    %29 = arith.negf %28 : vector<1x32xf32>
    %30 = math.exp %29 : vector<1x32xf32>
    %cst_29 = arith.constant 1.000000e+00 : f32
    %31 = vector.broadcast %cst_29 : f32 to vector<1x32xf32>
    %32 = arith.addf %31, %30 : vector<1x32xf32>
    %33 = arith.divf %31, %32 : vector<1x32xf32>
    %34 = vector.shape_cast %18 : vector<1x32xf32> to vector<1x32x1xf32>
    %35 = vector.broadcast %34 : vector<1x32x1xf32> to vector<1x32x256xf32>
    %36 = arith.mulf %0, %35 : vector<1x32x256xf32>
    %37 = vector.shape_cast %33 : vector<1x32xf32> to vector<1x32x1xf32>
    %38 = vector.broadcast %37 : vector<1x32x1xf32> to vector<1x32x256xf32>
    %39 = arith.mulf %1, %38 : vector<1x32x256xf32>
    %40 = arith.addf %36, %39 : vector<1x32x256xf32>
    %c0_30 = arith.constant 0 : index
    %c0_31 = arith.constant 0 : index
    %c0_32 = arith.constant 0 : index
    %41 = vector.load %arg11[%c0_30, %c0_31, %c0_32] : memref<1x32x256xf32, #tpu.memory_space<vmem>>, vector<1x32x256xf32>
    tpu.vector_store %arg11[%c0_30, %c0_31, %c0_32], %40 {strides = array<i32>} : memref<1x32x256xf32, #tpu.memory_space<vmem>>, vector<1x32x256xf32>,
    return
  }
  func.func @transform_0(%arg0: i32) -> (i32, i32, i32) {
    %c0_i32 = arith.constant 0 : i32
    %c0_i32_0 = arith.constant 0 : i32
    %c0_i32_1 = arith.constant 0 : i32
    return %arg0, %c0_i32, %c0_i32_0 : i32, i32, i32
  }
  func.func @transform_1(%arg0: i32) -> (i32, i32, i32) {
    %c0_i32 = arith.constant 0 : i32
    %c0_i32_0 = arith.constant 0 : i32
    %c0_i32_1 = arith.constant 0 : i32
    return %arg0, %c0_i32, %c0_i32_0 : i32, i32, i32
  }
  func.func @transform_2(%arg0: i32) -> (i32, i32) {
    %c0_i32 = arith.constant 0 : i32
    %c0_i32_0 = arith.constant 0 : i32
    %c0_i32_1 = arith.constant 0 : i32
    return %c0_i32, %c0_i32_0 : i32, i32
  }
  func.func @transform_3(%arg0: i32) -> (i32, i32) {
    %c0_i32 = arith.constant 0 : i32
    %c0_i32_0 = arith.constant 0 : i32
    %c0_i32_1 = arith.constant 0 : i32
    return %c0_i32, %c0_i32_0 : i32, i32
  }
  func.func @transform_4(%arg0: i32) -> (i32, i32) {
    %c0_i32 = arith.constant 0 : i32
    %c0_i32_0 = arith.constant 0 : i32
    %c0_i32_1 = arith.constant 0 : i32
    return %c0_i32, %c0_i32_0 : i32, i32
  }
  func.func @transform_5(%arg0: i32) -> (i32, i32) {
    %c0_i32 = arith.constant 0 : i32
    %c0_i32_0 = arith.constant 0 : i32
    %c0_i32_1 = arith.constant 0 : i32
    return %c0_i32, %c0_i32_0 : i32, i32
  }
  func.func @transform_6(%arg0: i32) -> (i32, i32) {
    %c0_i32 = arith.constant 0 : i32
    %c0_i32_0 = arith.constant 0 : i32
    %c0_i32_1 = arith.constant 0 : i32
    return %c0_i32, %c0_i32_0 : i32, i32
  }
  func.func @transform_7(%arg0: i32) -> (i32, i32) {
    %c0_i32 = arith.constant 0 : i32
    %c0_i32_0 = arith.constant 0 : i32
    %c0_i32_1 = arith.constant 0 : i32
    return %c0_i32, %c0_i32_0 : i32, i32
  }
  func.func @transform_8(%arg0: i32) -> (i32, i32) {
    %c0_i32 = arith.constant 0 : i32
    %c0_i32_0 = arith.constant 0 : i32
    %c0_i32_1 = arith.constant 0 : i32
    return %c0_i32, %c0_i32_0 : i32, i32
  }
  func.func @transform_9(%arg0: i32) -> (i32, i32) {
    %c0_i32 = arith.constant 0 : i32
    %c0_i32_0 = arith.constant 0 : i32
    %c0_i32_1 = arith.constant 0 : i32
    return %c0_i32, %c0_i32_0 : i32, i32
  }
  func.func @transform_10(%arg0: i32) -> (i32, i32, i32) {
    %c0_i32 = arith.constant 0 : i32
    %c0_i32_0 = arith.constant 0 : i32
    %c0_i32_1 = arith.constant 0 : i32
    return %arg0, %c0_i32, %c0_i32_0 : i32, i32, i32
  }
}

</mosaic_0001>

<bundles_post_ra>
// kernel: tpu_custom_call.1
= control target key start
LH: loop header
LB: loop body
LE: loop exit
PB: predicated region body
PF: predicated region fallthrough
CT: control target
= control target key end

     0   :  { %s1725_s0 = inlined_call_operand.hbm [shape: f32[2,32,256], index: 0, kind: input, shape index: {}]   ;;  %s1726_s1 = inlined_call_operand.hbm [shape: f32[2,32,256], index: 1, kind: input, shape index: {}]   ;;  %s1727_s2 = inlined_call_operand.vmem [shape: f32[32,2], index: 2, kind: input, shape index: {}]   ;;  %s1728_s3 = inlined_call_operand.vmem [shape: f32[1,2], index: 3, kind: input, shape index: {}]   ;;  %s1729_s4 = inlined_call_operand.vmem [shape: f32[2,32], index: 4, kind: input, shape index: {}]   ;;  %s1730_s5 = inlined_call_operand.vmem [shape: f32[1,32], index: 5, kind: input, shape index: {}]   ;;  %s1731_s6 = inlined_call_operand.vmem [shape: f32[32,2], index: 6, kind: input, shape index: {}]   ;;  %s1732_s7 = inlined_call_operand.vmem [shape: f32[1,2], index: 7, kind: input, shape index: {}]   ;;  %s1733_s8 = inlined_call_operand.vmem [shape: f32[2,32], index: 8, kind: input, shape index: {}]   ;;  %s1734_s9 = inlined_call_operand.vmem [shape: f32[1,32], index: 9, kind: input, shape index: {}]   ;;  %s1735_s10 = inlined_call_operand.hbm [shape: f32[2,32,256], index: 10, kind: output, shape index: {}]  }
   0x1   :  { %1745 = sst [smem:[#allocation15_spill]] %s1725_s0 }
   0x2   :  { %15 = vsyncpa [#allocation3], 0 }
   0x3   :  { %17 = vsyncpa [#allocation3 + $0x1], 0 }
   0x4   :  { %18 = vsyncpa [#allocation6], 0 }
   0x5   :  { %20 = vsyncpa [#allocation6 + $0x1], 0 }
   0x6   :  { %21 = vsyncpa [#allocation4], 0 }
   0x7   :  { %23 = vsyncpa [#allocation4 + $0x1], 0  ;;  %s1349_s13 = smov 0   ;;  %s1351_s14 = smov 0  }
   0x8   :  { %s1353_s15 = smov 0   ;;  %s1355_s16 = smov 0  }
   0x9 LB: > { %1746 = sst [smem:[#allocation11_spill]] %s1279_s15  ;;  %s1370_s17 = sadd.s32 4294967295, %s1283_s16   ;;  %s1283_s16 = sphi %s1355_s16, %s1766_s16   ;;  %s1279_s15 = sphi %s1353_s15, %s1768_s15   ;;  %s1275_s14 = sphi %s1351_s14, %s1770_s14   ;;  %s1271_s13 = sphi %s1349_s13, %s1769_s13  }
   0xa   : > { %s1019_s18 = sadd.s32 4294967294, %s1283_s16   ;;  %s1374_s19 = sadd.s32 1, %s1283_s16  }
   0xb   : > { %1747 = sst [smem:[#allocation12_spill]] %s1374_s19  ;;  %s36_s20 = sadd.s32 1, %s1279_s15 }
   0xc   : > { %s33_s21 = ssub.s32 %s1283_s16, %s1374_s19  ;;  %p43_p0 = scmp.ne.s32.totalorder %s1279_s15, %s1275_s14 }
   0xd   : > { %p34_p1 = scmp.eq.s32.totalorder %s33_s21, 0  ;;  %p44_p2 = scmp.eq.s32.totalorder %s1283_s16, 0 }
   0xe   : > { %p49_p3 = scmp.ne.s32.totalorder %s1275_s14, %s1271_s13  ;;  %p50_p4 = scmp.eq.s32.totalorder %s1370_s17, 0 }
   0xf   : > { %s1386_s22 = scalar_select %p34_p1, %s1279_s15, %s36_s20  }
  0x10   : > { %p1388_p5 = por %p44_p2, %p43_p0  ;;  %p1392_p6 = por %p50_p4, %p49_p3 }
  0x11   : > { %1748 = sst [smem:[#allocation13_spill]] %s1386_s22  ;;  %p267_p7 = scmp.eq.s32.totalorder %s1370_s17, 1 }
  0x12   : > { %s1750_s24 = scalar_select %p1392_p6, 1, 0 }
  0x13   : > { %p273_p8 = scmp.eq.s32.totalorder %s1019_s18, 1  ;;  %p1111_p10 = scmp.lt.s32.totalorder %s1283_s16, 2 }
  0x14   : > { %p1399_p11 = por %p267_p7, %p43_p0  ;;  %s1408_s27 = sand.u32 1, %s1279_s15  }
  0x15   : > { %p1403_p12 = por %p273_p8, %p49_p3  ;;  %s1738_s28 = sshll.u32 %s1283_s16, 10 }
  0x16   : > { %s1751_s25 = scalar_select %p1399_p11, 1, 0 }
  0x17   : > { %s1752_s26 = scalar_select %p1403_p12, 1, 0 }
  0x18   : > { %s1737_s29 = sshll.u32 %s1408_s27, 6  ;;  %s1754_s0 = sld [smem:[#allocation15_spill]] }
  0x19   : > { %1753 = sst [smem:[#allocation14_spill]] %s1752_s26  ;;  %s321_s18 = scalar_lea.vmem [#allocation2], %s1737_s29 }
  0x1a   : > { %s328_s20 = sshll.u32 %s321_s18, 4  ;;  %p1423_p13 = pnand %p1111_p10, %p1388_p5  ;;  %s1427_s20 = int_to_ptr.vmem [resolvable:$true] %s328_s20 }
  0x1c   : > { %p1161_p1 = pneg %p1423_p13 }
  0x1e   : > { %s1417_s12 = scalar_lea.hbm %s1754_s0, %s1738_s28  ;;  %s1164_s23 = scalar_lea.hbm %s1754_s0, 2048 }
  0x1f   : > { %s1159_s15 = scalar_lea.hbm %s1417_s12, 1024  ;;  %p1165_p4 = scmp.lt.s32.totalorder %s1417_s12, %s1754_s0 }
  0x20   : > { %p1160_p0 = scmp.ne.s32.totalorder %s1417_s12, %s1159_s15  ;;  %p1166_p5 = scmp.lt.s32.totalorder %s1164_s23, %s1159_s15 }
  0x22   : > { %p1162_p2 = pnand %p1161_p1, %p1160_p0  ;;  %p1167_p7 = por %p1166_p5, %p1165_p4 }
  0x24   : > { %p1163_p3 = pneg %p1162_p2 }
  0x26   : > { %p1168_p8 = pnand %p1167_p7, %p1163_p3 }
  0x28   : > { %1171 = shalt.err (!%p1168_p8)
}
  0x29   : > { %s1172_s28 = scalar_lea.vmem %s1427_s20, 1024  ;;  %s1285_s30 = smov [#allocation2]  }
  0x2a   : > { %p1173_p10 = scmp.ne.s32.totalorder %s1427_s20, %s1172_s28  ;;  %s1177_s11 = sshll.u32 %s1285_s30, 4  ;;  %s1178_s11 = int_to_ptr.vmem [resolvable:$false] %s1177_s11 }
  0x2b   : > { %s1179_s22 = scalar_lea.vmem %s1178_s11, 2048  ;;  %p1180_p9 = scmp.lt.s32.totalorder %s1427_s20, %s1178_s11 }
  0x2c   : > { %p1175_p0 = pnand %p1173_p10, %p1161_p1  ;;  %p1181_p12 = scmp.lt.s32.totalorder %s1179_s22, %s1172_s28 }
  0x2e   : > { %p1176_p2 = pneg %p1175_p0  ;;  %p1182_p11 = por %p1181_p12, %p1180_p9 }
  0x30   : > { %p1183_p4 = pnand %p1182_p11, %p1176_p2 }
  0x32   : > { %1186 = shalt.err (!%p1183_p4)
}
  0x33   : > { %s1743_s15 = smov 256   ;;  %s1287_s29 = smov 16  }
  0x34   : > { %s1756_s22 = scalar_lea.sflag [#allocation3], %s1408_s27  ;;  %p1028_p9 = scmp.ge.s32.totalorder %s1283_s16, 1 }
  0x35   : > { %1103 = dma.hbm_to_vmem [thread:$0]  (!%p1423_p13), %s1417_s12, 1024, %s1427_s20, %s1756_s22, %s1743_s15, %s1743_s15, %s1287_s29  }
  0x36   : > { %p357_p11 = scmp.lt.s32.totalorder %s1283_s16, 3  ;;  %s1758_s23 = sshll.u32 %s1283_s16, 10 }
  0x37   : > { %s1470_s11 = scalar_lea.hbm %s1726_s1, %s1758_s23  ;;  %s1759_s0 = sshll.u32 %s1408_s27, 6 }
  0x38   : > { %p1461_p12 = pnand %p1028_p9, %p357_p11  ;;  %s342_s19 = scalar_lea.vmem [#allocation5], %s1759_s0 }
  0x39   : > { %s349_s26 = sshll.u32 %s342_s19, 4  ;;  %s339_s12 = scalar_lea.sflag [#allocation6], %s1408_s27  ;;  %s1474_s26 = int_to_ptr.vmem [resolvable:$true] %s349_s26 }
  0x3a   : > { %s1187_s20 = scalar_lea.hbm %s1470_s11, 1024  ;;  %s1192_s23 = scalar_lea.hbm %s1726_s1, 2048 }
  0x3b   : > { %p1188_p3 = scmp.ne.s32.totalorder %s1470_s11, %s1187_s20  ;;  %p1193_p8 = scmp.lt.s32.totalorder %s1470_s11, %s1726_s1 }
  0x3c   : > { %p1194_p10 = scmp.lt.s32.totalorder %s1192_s23, %s1187_s20 }
  0x3d   : > { %p1190_p5 = pnand %p1188_p3, %p1161_p1 }
  0x3e   : > { %p1195_p0 = por %p1194_p10, %p1193_p8 }
  0x3f   : > { %p1191_p7 = pneg %p1190_p5 }
  0x41   : > { %p1196_p2 = pnand %p1195_p0, %p1191_p7 }
  0x43   : > { %1199 = shalt.err (!%p1196_p2)
}
  0x44   : > { %s1200_s0 = scalar_lea.vmem %s1474_s26, 1024  ;;  %s1288_s19 = smov [#allocation5]  }
  0x45   : > { %p1201_p4 = scmp.ne.s32.totalorder %s1474_s26, %s1200_s0  ;;  %s1205_s27 = sshll.u32 %s1288_s19, 4  ;;  %s1206_s27 = int_to_ptr.vmem [resolvable:$false] %s1205_s27 }
  0x46   : > { %s1207_s15 = scalar_lea.vmem %s1206_s27, 2048  ;;  %p1208_p3 = scmp.lt.s32.totalorder %s1474_s26, %s1206_s27 }
  0x47   : > { %p1203_p9 = pnand %p1201_p4, %p1161_p1  ;;  %p1209_p5 = scmp.lt.s32.totalorder %s1207_s15, %s1200_s0 }
  0x49   : > { %p1204_p11 = pneg %p1203_p9  ;;  %p1210_p6 = por %p1209_p5, %p1208_p3 }
  0x4b   : > { %p1211_p8 = pnand %p1210_p6, %p1204_p11 }
  0x4d   : > { %1214 = shalt.err (!%p1211_p8)
}
  0x4e   : > { %s1760_s20 = smov 256   ;;  %361 = sbr.rel (%p1461_p12) target bundleno = 1005 (0x3ed), region = 60 }
  0x4f   : > { %1106 = dma.hbm_to_vmem [thread:$0]  (!%p1423_p13), %s1470_s11, 1024, %s1474_s26, %s339_s12, %s1760_s20, %s1760_s20, %s1287_s29  }
  0x50   : > { %s1505_s22 = sand.u32 (!%p1461_p12), 1, %s1275_s14   ;;  %p1761_p6 = scmp.ne.s32.totalorder (!%p1461_p12), %s1750_s24, 0 }
  0x51   : > { %s1508_s23 = sshll.u32 (!%p1461_p12), %s1505_s22, 6  ;;  %s364_s18 = scalar_lea.sflag (!%p1461_p12), [#allocation3], %s1505_s22 }
  0x52   : > { %s367_s21 = scalar_lea.vmem (!%p1461_p12), [#allocation2], %s1508_s23 }
  0x53   : > { %1258 = dma.done.wait (%p1761_p6), %s364_s18, 1024  }
  0x54   : > { %1260 = vsyncadd (%p1761_p6), %s364_s18, 4294966272  ;;  %s373_s26 = scalar_lea.sflag [#allocation6], %s1505_s22  ;;  %s1518_s29 = scalar_lea.vmem [#allocation5], %s1508_s23 }
  0x55   : > { %1262 = dma.done.wait (%p1761_p6), %s373_s26, 1024  }
  0x56   : > { %1264 = vsyncadd (%p1761_p6), %s373_s26, 4294966272  ;;  %v1524_v0 = vld [vmem:[%s367_s21] sm:$0xff]  ;;  %v1526_v1 = vld [vmem:[%s367_s21 + $0x8] sm:$0xff]  ;;  %v1289_v12 = vmov 0.0   ;;  %vm1290_vm0 = vmmov 0   ;;  %v469_v29 = vlaneseq  ;;  %vm480_vm1 = vcmask 130112  }
  0x57   : > { %v1528_v2 = vld [vmem:[%s367_s21 + $0x20] sm:$0xff]  ;;  %v434_v3 = vadd.f32 %v1526_v1, %v1524_v0  ;;  %v1532_v4 = vld [vmem:[%s367_s21 + $0x28] sm:$0xff]  ;;  %v1534_v5 = vld [vmem:[%s367_s21 + $0x10] sm:$0xff]  ;;  %1062 = vmatprep.subr.mxu0 %v1289_v12  ;;  %1073 = vmatprep.subr.mxu1 %v1289_v12  ;;  %vm487_vm2 = vcmask 195712   ;;  %vm494_vm3 = vcmask 261312   ;;  %vm496_vm4 = vcmask 261120  }
  0x58   : > { %v1536_v6 = vld [vmem:[%s367_s21 + $0x18] sm:$0xff]  ;;  %v440_v7 = vadd.f32 %v1532_v4, %v1528_v2  ;;  %v1540_v8 = vld [vmem:[%s367_s21 + $0x30] sm:$0xff]  ;;  %v459_v15 = vld [vmem:[%s1727_s2 + $0x8] sm:$0xff]  ;;  %1070 = vmatprep.mubr.msk.f32.mxu0 %vm1290_vm0, %v1289_v12  ;;  %1075 = vmatprep.mubr.msk.f32.mxu1 %vm1290_vm0, %v1289_v12  ;;  %v470_v30 = vand.u32 127, %v469_v29  ;;  %v1602_v31 = vshrl.u32 %v469_v29, 7  ;;  %vm574_vm5 = vcmask 1041408  }
  0x59   : > { %v1542_v9 = vld [vmem:[%s367_s21 + $0x38] sm:$0xff]  ;;  %435 = vadd.xlane.f32.xlu0 %v434_v3  ;;  %v437_v10 = vadd.f32 %v1536_v6, %v1534_v5  ;;  %v460_v14 = vld [vmem:[%s1727_s2 + $0x10] sm:$0xff]  ;;  %v458_v16 = vld [vmem:[%s1727_s2] sm:$0xff]  ;;  %vm570_vm6 = vcmask 15360   ;;  %s1047_s24 = sshll.u32 %s1370_s17, 10  ;;  %s417_s28 = scalar_lea.vmem [#allocation7], %s1508_s23 }
  0x5a   : > { %441 = vadd.xlane.f32.xlu1 %v440_v7  ;;  %v443_v11 = vadd.f32 %v1542_v9, %v1540_v8  ;;  %v461_v13 = vld [vmem:[%s1727_s2 + $0x18] sm:$0xff]  ;;  %v1570_v17 = vld [vmem:[%s1518_s29] sm:$0xff]  ;;  %v1573_v18 = vld [vmem:[%s1518_s29 + $0x8] sm:$0xff]  ;;  %v475_v32 = vadd.s32 4294967288, %v470_v30  ;;  %v482_v33 = vadd.s32 4294967280, %v470_v30  ;;  %v489_v34 = vadd.s32 4294967272, %v470_v30  ;;  %s1680_s12 = scalar_lea.hbm %s1735_s10, %s1047_s24 }
  0x5b   : > { %1063 = vmatpush3.msra.mxu0 %v461_v13  ;;  %v1576_v19 = vld [vmem:[%s1518_s29 + $0x10] sm:$0xff]  ;;  %v446_v20 = vadd.f32 %v1573_v18, %v1570_v17  ;;  %v1582_v21 = vld [vmem:[%s1518_s29 + $0x18] sm:$0xff]  ;;  %v1585_v22 = vld [vmem:[%s1518_s29 + $0x20] sm:$0xff]  ;;  %v473_v36 = vsub.s32 %v470_v30, %v1602_v31  ;;  %s923_s11 = sshll.u32 %s417_s28, 4  ;;  %s910_s30 = scalar_lea.sflag [#allocation4], %s1505_s22  ;;  %s1682_s11 = int_to_ptr.vmem [resolvable:$true] %s923_s11 }
  0x5c   : > { %1064 = vmatprep.subr.mxu0 %v1289_v12  ;;  %v1588_v23 = vld [vmem:[%s1518_s29 + $0x28] sm:$0xff]  ;;  %v449_v24 = vadd.f32 %v1582_v21, %v1576_v19  ;;  %v1593_v25 = vld [vmem:[%s1518_s29 + $0x30] sm:$0xff]  ;;  %v1596_v26 = vld [vmem:[%s1518_s29 + $0x38] sm:$0xff]  ;;  %v478_v38 = vsub.s32 %v475_v32, %v1602_v31  ;;  %v485_v39 = vsub.s32 %v482_v33, %v1602_v31  ;;  %v492_v40 = vsub.s32 %v489_v34, %v1602_v31  ;;  %s1215_s0 = scalar_lea.vmem %s1682_s11, 1024  ;;  %p1762_p1 = scmp.ne.s32.totalorder %s1751_s25, 0 }
  0x5d   : > { %438 = vadd.xlane.f32.xlu0 %v437_v10  ;;  %1065 = vmatpush3.msra.mxu0 %v460_v14  ;;  %v452_v27 = vadd.f32 %v1588_v23, %v1585_v22  ;;  %v455_v28 = vadd.f32 %v1596_v26, %v1593_v25  ;;  %v463_v50 = vld [vmem:[%s1729_s4] sm:$0x3]  ;;  %v657_v61 = vld [vmem:[%s1731_s6 + $0x18] sm:$0xff]  ;;  %v656_v3 = vld [vmem:[%s1731_s6 + $0x10] sm:$0xff]  ;;  %p1216_p13 = scmp.ne.s32.totalorder %s1682_s11, %s1215_s0  ;;  %s1291_s19 = smov [#allocation7]  }
  0x5e   : > { %444 = vadd.xlane.f32.xlu1 %v443_v11  ;;  %1066 = vmatprep.subr.mxu0 %v1289_v12  ;;  %v462_v52 = vld [vmem:[%s1728_s3] sm:$0x1]  ;;  %v655_v10 = vld [vmem:[%s1731_s6 + $0x8] sm:$0xff]  ;;  %s1219_s27 = sshll.u32 %s1291_s19, 4  ;;  %s1220_s27 = int_to_ptr.vmem [resolvable:$false] %s1219_s27 }
  0x5f   : > { %1067 = vmatpush3.msra.mxu0 %v459_v15  ;;  %1074 = vmatpush3.msk.msra.mxu1 %vm574_vm5, %v463_v50  ;;  %v654_v14 = vld [vmem:[%s1731_s6] sm:$0xff]  ;;  %p1217_p12 = pnand %p1216_p13, %p1762_p1  ;;  %s1221_s15 = scalar_lea.vmem %s1220_s27, 2048 }
  0x60   : > { %1068 = vmatprep.subr.mxu0 %v1289_v12  ;;  %1078 = vmatprep.subr.mxu1 %v1289_v12  ;;  %p1222_p10 = scmp.lt.s32.totalorder %s1682_s11, %s1220_s27  ;;  %p1223_p0 = scmp.lt.s32.totalorder %s1221_s15, %s1215_s0 }
  0x61   : > { %1069 = vmatpush3.msra.mxu0 %v458_v16  ;;  %447 = vadd.xlane.f32.xlu0 %v446_v20  ;;  %v659_v16 = vld [vmem:[%s1733_s8] sm:$0x3]  ;;  %p1218_p7 = pneg %p1217_p12 }
  0x62   : > { %1089 = vmatprep.subr.mxu0 %v1289_v12  ;;  %450 = vadd.xlane.f32.xlu1 %v449_v24  ;;  %v464_v20 = vld [vmem:[%s1730_s5] sm:$0x1]  ;;  %p1224_p2 = por %p1223_p0, %p1222_p10 }
  0x64   : > { %p1225_p4 = pnand %p1224_p2, %p1218_p7 }
  0x65   : > { %453 = vadd.xlane.f32.xlu0 %v452_v27 }
  0x66   : > { %456 = vadd.xlane.f32.xlu1 %v455_v28 }
  0xe2   : > { %v436_v35 = vpop.xlane.xlu0 %435 }
  0xe3   : > { %v442_v37 = vpop.xlane.xlu1 %441  ;;  %v474_v42 = vrot.slane %v436_v35, %v473_v36 }
  0xe4   : > { %v486_v45 = vrot.slane %v442_v37, %v485_v39  ;;  %v841_v37 = vsub.s32 0, %v1602_v31 }
  0xe6   : > { %v439_v41 = vpop.xlane.xlu0 %438 }
  0xe7   : > { %v479_v43 = vrot.slane %v439_v41, %v478_v38  ;;  %v445_v44 = vpop.xlane.xlu1 %444 }
  0xe8   : > { %v493_v46 = vrot.slane %v445_v44, %v492_v40 }
  0xe9   : > { %v481_v47 = vsel %vm480_vm1, %v479_v43, %v474_v42 }
  0xea   : > { %v488_v48 = vsel %vm487_vm2, %v486_v45, %v481_v47  ;;  %v448_v51 = vpop.xlane.xlu0 %447 }
  0xeb   : > { %v495_v49 = vsel %vm494_vm3, %v493_v46, %v488_v48  ;;  %v451_v53 = vpop.xlane.xlu1 %450  ;;  %v668_v56 = vrot.slane %v448_v51, %v473_v36 }
  0xec   : > { %1071 = vmatmul.mubr.msk.f32.vlgmr.msra.gmra.mxu0 %vm496_vm4, %v495_v49  ;;  %v672_v57 = vrot.slane %v451_v53, %v478_v38 }
  0xed   : > { %1091 = vmatprep.mubr.msk.f32.mxu0 %vm1290_vm0, %v1289_v12  ;;  %1090 = vmatpush3.msk.msra.mxu0 %vm574_vm5, %v659_v16 }
  0xee   : > { %v454_v59 = vpop.xlane.xlu0 %453  ;;  %v673_v7 = vsel %vm480_vm1, %v672_v57, %v668_v56 }
  0xef   : > { %v677_v62 = vrot.slane %v454_v59, %v485_v39  ;;  %v457_v63 = vpop.xlane.xlu1 %456 }
  0xf0   : > { %v682_v11 = vrot.slane %v457_v63, %v492_v40  ;;  %v660_v40 = vld [vmem:[%s1734_s9] sm:$0x1] }
  0xf1   : > { %v678_v13 = vsel %vm487_vm2, %v677_v62, %v673_v7 }
  0xf2   : > { %v683_v15 = vsel %vm494_vm3, %v682_v11, %v678_v13 }
 0x1ac   : > { %v565_v54 = vpop.f32.mrf.mxu0 }
 0x1ad   : > { %v566_v55 = vadd.f32 %v565_v54, %v462_v52 }
 0x1ae   : > { %v1072_v58 = vpop.f32.mrf.mxu0 }
 0x1af   : > { %v569_v60 = vmax.f32 %v566_v55, 0.0 }
 0x1b1   : > { %1076 = vmatmul.mubr.msk.f32.vlgmr.msra.gmra.mxu1 %vm570_vm6, %v569_v60 }
 0x1b2   : > { %1079 = vmatpush3.msra.mxu1 %v657_v61  ;;  %1086 = vmatprep.mubr.msk.f32.mxu1 %vm1290_vm0, %v1289_v12 }
 0x1b3   : > { %1080 = vmatprep.subr.mxu1 %v1289_v12 }
 0x1b4   : > { %1081 = vmatpush3.msra.mxu1 %v656_v3 }
 0x1b5   : > { %1082 = vmatprep.subr.mxu1 %v1289_v12 }
 0x1b6   : > { %1083 = vmatpush3.msra.mxu1 %v655_v10 }
 0x1b7   : > { %1084 = vmatprep.subr.mxu1 %v1289_v12  ;;  %v658_v12 = vld [vmem:[%s1732_s7] sm:$0x1] }
 0x1b8   : > { %1085 = vmatpush3.msra.mxu1 %v654_v14 }
 0x1b9   : > { %1087 = vmatmul.mubr.msk.f32.vlgmr.msra.gmra.mxu1 %vm496_vm4, %v683_v15 }
 0x271   : > { %v644_v24 = vpop.f32.mrf.mxu1 }
 0x272   : > { %v645_v27 = vadd.f32 %v644_v24, %v464_v20 }
 0x273   : > { %v1077_v28 = vpop.f32.mrf.mxu1 }
 0x274   : > { %v1035_v29 = vmul.f32 -1.442695, %v645_v27 }
 0x276   : > { %1151 = vpow2.f32 %v1035_v29 }
 0x279   : > { %v752_v30 = vpop.f32.mrf.mxu1 }
 0x27a   : > { %v753_v32 = vadd.f32 %v752_v30, %v658_v12 }
 0x27b   : > { %v1088_v33 = vpop.f32.mrf.mxu1 }
 0x27c   : > { %v756_v34 = vmax.f32 %v753_v32, 0.0 }
 0x27e   : > { %1092 = vmatmul.mubr.msk.f32.vlgmr.msra.gmra.mxu0 %vm570_vm6, %v756_v34 }
 0x283   : > { %v1152_v35 = vpop.eup %1151 }
 0x284   : > { %v651_v36 = vadd.f32 1.0, %v1152_v35 }
 0x286   : > { %1153 = vrcp.f32 %v651_v36 }
 0x293   : > { %v1154_v38 = vpop.eup %1153 }
 0x294   : > { %v842_v39 = vrot.slane %v1154_v38, %v841_v37 }
 0x296   : > { %848 = vbcast.lane.b32.xlu1 %v842_v39, 264  ;;  %844 = vbcast.lane.b32.xlu0 %v842_v39, 256 }
 0x29a   : > { %852 = vbcast.lane.b32.xlu1 %v842_v39, 272 }
 0x29e   : > { %856 = vbcast.lane.b32.xlu1 %v842_v39, 280 }
 0x308   : > { %v849_v48 = vpop.permute.xlu1 %848  ;;  %v845_v50 = vpop.permute.xlu0 %844 }
 0x309   : > { %v860_v52 = vmul.f32 %v849_v48, %v1534_v5  ;;  %v861_v53 = vmul.f32 %v849_v48, %v1536_v6  ;;  %v858_v54 = vmul.f32 %v845_v50, %v1524_v0  ;;  %v859_v55 = vmul.f32 %v845_v50, %v1526_v1 }
 0x30c   : > { %v853_v49 = vpop.permute.xlu1 %852 }
 0x30d   : > { %v862_v0 = vmul.f32 %v853_v49, %v1528_v2  ;;  %v863_v1 = vmul.f32 %v853_v49, %v1532_v4 }
 0x310   : > { %v857_v51 = vpop.permute.xlu1 %856 }
 0x311   : > { %v864_v6 = vmul.f32 %v857_v51, %v1540_v8 }
 0x33e   : > { %v829_v41 = vpop.f32.mrf.mxu0 }
 0x33f   : > { %v830_v42 = vadd.f32 %v829_v41, %v660_v40 }
 0x340   : > { %v1093_v43 = vpop.f32.mrf.mxu0 }
 0x341   : > { %v1039_v44 = vmul.f32 -1.442695, %v830_v42 }
 0x343   : > { %1155 = vpow2.f32 %v1039_v44 }
 0x350   : > { %v1156_v45 = vpop.eup %1155 }
 0x351   : > { %v836_v46 = vadd.f32 1.0, %v1156_v45 }
 0x353   : > { %1157 = vrcp.f32 %v836_v46 }
 0x360   : > { %v1158_v47 = vpop.eup %1157 }
 0x361   : > { %v869_v31 = vrot.slane %v1158_v47, %v841_v37 }
 0x363   : > { %875 = vbcast.lane.b32.xlu1 %v869_v31, 264  ;;  %871 = vbcast.lane.b32.xlu0 %v869_v31, 256 }
 0x367   : > { %883 = vbcast.lane.b32.xlu1 %v869_v31, 280  ;;  %879 = vbcast.lane.b32.xlu0 %v869_v31, 272 }
 0x3d5   : > { %v876_v56 = vpop.permute.xlu1 %875  ;;  %v872_v57 = vpop.permute.xlu0 %871 }
 0x3d6   : > { %v887_v58 = vmul.f32 %v876_v56, %v1576_v19  ;;  %v888_v59 = vmul.f32 %v876_v56, %v1582_v21  ;;  %v885_v60 = vmul.f32 %v872_v57, %v1570_v17  ;;  %v886_v61 = vmul.f32 %v872_v57, %v1573_v18 }
 0x3d7   : > { %v865_v19 = vmul.f32 %v857_v51, %v1542_v9 }
 0x3d8   : > { %v895_v62 = vadd.f32 %v887_v58, %v860_v52  ;;  %v896_v63 = vadd.f32 %v888_v59, %v861_v53  ;;  %v893_v3 = vadd.f32 %v885_v60, %v858_v54  ;;  %v894_v5 = vadd.f32 %v886_v61, %v859_v55 }
 0x3d9   : > { %v884_v21 = vpop.permute.xlu1 %883  ;;  %v880_v7 = vpop.permute.xlu0 %879 }
 0x3da   : > { %903 = vst [vmem:[%s417_s28 + $0x10] sm:$0xff] %v895_v62  ;;  %904 = vst [vmem:[%s417_s28 + $0x18] sm:$0xff] %v896_v63  ;;  %v891_v17 = vmul.f32 %v884_v21, %v1593_v25  ;;  %v892_v18 = vmul.f32 %v884_v21, %v1596_v26  ;;  %v889_v2 = vmul.f32 %v880_v7, %v1585_v22 }
 0x3db   : > { %901 = vst [vmem:[%s417_s28] sm:$0xff] %v893_v3  ;;  %902 = vst [vmem:[%s417_s28 + $0x8] sm:$0xff] %v894_v5  ;;  %v890_v4 = vmul.f32 %v880_v7, %v1588_v23 }
 0x3dc   : > { %v899_v8 = vadd.f32 %v891_v17, %v864_v6  ;;  %v900_v9 = vadd.f32 %v892_v18, %v865_v19  ;;  %v897_v25 = vadd.f32 %v889_v2, %v862_v0 }
 0x3dd   : > { %v898_v10 = vadd.f32 %v890_v4, %v863_v1 }
 0x3de   : > { %907 = vst [vmem:[%s417_s28 + $0x30] sm:$0xff] %v899_v8  ;;  %908 = vst [vmem:[%s417_s28 + $0x38] sm:$0xff] %v900_v9 }
 0x3df   : > { %905 = vst [vmem:[%s417_s28 + $0x20] sm:$0xff] %v897_v25  ;;  %906 = vst [vmem:[%s417_s28 + $0x28] sm:$0xff] %v898_v10 }
 0x3e0   : > { %1228 = shalt.err (!%p1225_p4)
}
 0x3e1   : > { %s1229_s20 = scalar_lea.hbm %s1680_s12, 1024  ;;  %s1233_s26 = scalar_lea.hbm %s1735_s10, 2048 }
 0x3e2   : > { %p1230_p9 = scmp.ne.s32.totalorder %s1680_s12, %s1229_s20  ;;  %p1234_p5 = scmp.lt.s32.totalorder %s1680_s12, %s1735_s10 }
 0x3e3   : > { %p1235_p8 = scmp.lt.s32.totalorder %s1233_s26, %s1229_s20 }
 0x3e4   : > { %p1231_p11 = pnand %p1230_p9, %p1762_p1 }
 0x3e5   : > { %p1236_p6 = por %p1235_p8, %p1234_p5 }
 0x3e6   : > { %p1232_p3 = pneg %p1231_p11 }
 0x3e8   : > { %p1237_p13 = pnand %p1236_p6, %p1232_p3 }
 0x3ea   : > { %1240 = shalt.err (!%p1237_p13)
}
 0x3eb   : > { %s1292_s28 = smov 256   ;;  %s1293_s17 = smov 16  }
 0x3ec   : > { %1098 = dma.vmem_to_hbm [thread:$0]  (%p1762_p1), %s1682_s11, 1024, %s1680_s12, %s910_s30, %s1292_s28, %s1292_s28, %s1293_s17  }
 0x3ed PF: > { %s1763_s23 = sld [smem:[#allocation14_spill]]  ;;  %s938_s0 = sand.u32 1, %s1271_s13  }
 0x3ee   : > { %p1765_p7 = scmp.ge.s32.totalorder %s1283_s16, 2  ;;  %s939_s19 = scalar_lea.sflag [#allocation4], %s938_s0 }
 0x3f3   : > { %p1764_p12 = scmp.ne.s32.totalorder %s1763_s23, 0 }
 0x3f5   : > { %p1108_p10 = pnand %p1765_p7, %p1764_p12 }
 0x3f7   : > { %p1109_p0 = pneg %p1108_p10 }
 0x3f9   : > { %1266 = dma.done.wait (%p1109_p0), %s939_s19, 1024  }
 0x3fa   : > { %1268 = vsyncadd (%p1109_p0), %s939_s19, 4294966272  ;;  %s1766_s16 = sld [smem:[#allocation12_spill]]  ;;  %s1769_s13 = smov %s1275_s14 }
 0x3fb   : > { %s1767_s27 = sld [smem:[#allocation11_spill]] }
 0x3fc   : > { %s1768_s15 = sld [smem:[#allocation13_spill]] }
 0x400   : > { %p26_p2 = scmp.ge.s32.totalorder %s1766_s16, 4  }
 0x401   : > { %s1770_s14 = smov %s1767_s27 }
 0x402   :  { %28 = sbr.rel (!%p26_p2) target bundleno = 9 (0x9), region = 118 }
 0x407   :  { %944 = vsyncpa [#allocation3], 1 }
 0x408   :  { %946 = vsyncpa [#allocation3 + $0x1], 1 }
 0x409   :  { %947 = vsyncpa [#allocation6], 1 }
 0x40a   :  { %949 = vsyncpa [#allocation6 + $0x1], 1 }
 0x40b   :  { %950 = vsyncpa [#allocation4], 1 }
 0x40c   :  { %952 = vsyncpa [#allocation4 + $0x1], 1 }

</bundles_post_ra>
